<compile_context>
chip_gen: v6e
topology: v6e:2x2x1
jax: 0.10.0
libtpu: 0.0.40
codegen_flags: <defaults>
</compile_context>

<pallas_src>
import math
from typing import NamedTuple

import jax
import jax.numpy as jnp
from jax.experimental import pallas as pl
from jax.experimental.pallas import tpu as pltpu


def _round_up(x: int, m: int) -> int:
    return ((x + m - 1) // m) * m


def _divisor_tile(limit: int, total: int) -> int:
    """Largest multiple of 128 that is <= limit and divides total (total % 128 == 0)."""
    t = max(128, (min(limit, total) // 128) * 128)
    while total % t:
        t -= 128
    return t


def _vmem_limit(working_set_bytes: int) -> int:
    # Generous headroom over the per-step working set, but never above v7x's
    # 64 MiB physical VMEM (v5e/v6e have 128 MiB, so this is safe everywhere).
    return int(min(64 * 1024 * 1024, max(32 * 1024 * 1024, 2 * working_set_bytes)))


class PreparedAdj(NamedTuple):
    adj_p: jax.Array      # [n_p, n_p] zero-padded adjacency, compute dtype
    block_tbl: jax.Array  # [n_i * n_k] int32: nonzero column-block ids per row tile
    block_cnt: jax.Array  # [n_i] int32: number of nonzero column blocks per row tile
    n_nodes: int
    n_p: int
    tm: int
    tk: int


def prepare_adjacency(adj, *, block_m=1024, block_k=1024,
                      compute_dtype=jnp.bfloat16) -> PreparedAdj:
    """Pad + cast the dense adjacency and build the nonzero-block table.

    Hoisted out of the layer call so multi-layer / multi-step GCNs pay the
    O(N^2) pad/cast and the block scan once per graph.
    """
    N = adj.shape[0]
    n_p = _round_up(N, 128)
    tm = _divisor_tile(block_m, n_p)
    # v7x megacore: keep >= 2 row tiles so the "parallel" axis can split
    # across both TensorCores.
    if n_p // tm < 2 and n_p >= 256:
        tm = _divisor_tile(_round_up(n_p // 2, 128), n_p)
    tk = _divisor_tile(block_k, n_p)

    adj_p = jnp.zeros((n_p, n_p), compute_dtype).at[:N, :N].set(
        adj.astype(compute_dtype))

    n_i, n_k = n_p // tm, n_p // tk
    nz = jnp.any(adj_p.reshape(n_i, tm, n_k, tk) != 0, axis=(1, 3))   # [n_i, n_k]
    cnt = jnp.sum(nz, axis=1, dtype=jnp.int32)                        # [n_i]
    # Nonzero blocks first; stable sort keeps them in ascending k order.
    order = jnp.argsort(jnp.where(nz, 0, 1), axis=1).astype(jnp.int32)
    # Padded entries repeat the last nonzero block id: a repeated block index
    # needs no new DMA, and pl.when(k < cnt) skips its compute.
    last = order[jnp.arange(n_i), jnp.maximum(cnt - 1, 0)]            # [n_i]
    ks = jnp.arange(n_k, dtype=jnp.int32)[None, :]
    tbl = jnp.where(ks < cnt[:, None], order, last[:, None]).astype(jnp.int32)
    return PreparedAdj(adj_p, tbl.reshape(-1), cnt, N, n_p, tm, tk)


# --------------------------- kernel bodies ---------------------------------

def _support_kernel(x_ref, w_ref, o_ref, acc_ref):
    """support = X @ W, tiled over (row tiles, F_in reduction tiles)."""
    k = pl.program_id(1)

    @pl.when(k == 0)
    def _init():
        acc_ref[...] = jnp.zeros_like(acc_ref)

    acc_ref[...] += jnp.dot(x_ref[...], w_ref[...],
                            preferred_element_type=jnp.float32)

    @pl.when(k == pl.num_programs(1) - 1)
    def _store():
        # single rounding to the compute dtype before the aggregation matmul
        o_ref[...] = acc_ref[...].astype(o_ref.dtype)


def _aggregate_kernel(tbl_ref, cnt_ref, adj_ref, sup_ref, b_ref, o_ref, acc_ref):
    """out = adj @ support + bias, skipping all-zero adjacency blocks."""
    i = pl.program_id(0)
    k = pl.program_id(1)

    @pl.when(k == 0)
    def _init():
        acc_ref[...] = jnp.zeros_like(acc_ref)

    @pl.when(k < cnt_ref[i])          # only nonzero adjacency blocks do work
    def _accum():
        acc_ref[...] += jnp.dot(adj_ref[...], sup_ref[...],
                                preferred_element_type=jnp.float32)

    @pl.when(k == pl.num_programs(1) - 1)
    def _finalize():
        # bias added exactly once, in f32, then a single cast to output dtype
        o_ref[...] = (acc_ref[...] + b_ref[...]).astype(o_ref.dtype)


# ----------------------------- wrapper --------------------------------------

def graph_convolution(x, prepared: PreparedAdj, weight, bias, *,
                      compute_dtype=jnp.bfloat16):
    """x: [N, F_in], prepared: PreparedAdj for the graph, weight: [F_in, F_out],
    bias: [F_out]. Returns [N, F_out] in x.dtype."""
    N, F_in = x.shape
    F_out = weight.shape[1]
    assert N == prepared.n_nodes, "adjacency was prepared for a different graph"
    out_dtype = x.dtype

    n_p, tm, tk = prepared.n_p, prepared.tm, prepared.tk
    f_in_p = _round_up(F_in, 128)
    f_out_p = _round_up(F_out, 128)

    # Zero padding keeps the math exact; padded rows/cols are sliced off below.
    x_p = jnp.zeros((n_p, f_in_p), compute_dtype).at[:N, :F_in].set(
        x.astype(compute_dtype))
    w_p = jnp.zeros((f_in_p, f_out_p), compute_dtype).at[:F_in, :F_out].set(
        weight.astype(compute_dtype))
    b_p = jnp.zeros((1, f_out_p), jnp.float32).at[0, :F_out].set(
        bias.astype(jnp.float32))

    # --- 1) support = X @ W, computed exactly once ---------------------------
    tkf = _divisor_tile(512, f_in_p)
    support = pl.pallas_call(
        _support_kernel,
        out_shape=jax.ShapeDtypeStruct((n_p, f_out_p), compute_dtype),
        grid_spec=pltpu.PrefetchScalarGridSpec(
            num_scalar_prefetch=0,
            grid=(n_p // tm, f_in_p // tkf),
            in_specs=[
                pl.BlockSpec((tm, tkf), lambda i, k: (i, k)),          # X tile
                pl.BlockSpec((tkf, f_out_p), lambda i, k: (k, 0)),     # W tile
            ],
            out_specs=pl.BlockSpec((tm, f_out_p), lambda i, k: (i, 0)),
            scratch_shapes=[pltpu.VMEM((tm, f_out_p), jnp.float32)],
        ),
        compiler_params=pltpu.CompilerParams(
            dimension_semantics=("parallel", "arbitrary"),
            vmem_limit_bytes=_vmem_limit(
                2 * tm * tkf * 2 + 2 * tkf * f_out_p * 2
                + 2 * tm * f_out_p * 2 + tm * f_out_p * 4),
        ),
    )(x_p, w_p)

    # --- 2) out = adj @ support + bias, block-sparse over adjacency tiles ----
    n_k = n_p // tk
    out_itemsize = jnp.dtype(out_dtype).itemsize
    out_p = pl.pallas_call(
        _aggregate_kernel,
        out_shape=jax.ShapeDtypeStruct((n_p, f_out_p), out_dtype),
        grid_spec=pltpu.PrefetchScalarGridSpec(
            num_scalar_prefetch=2,     # block table + per-row-tile block count
            grid=(n_p // tm, n_k),
            in_specs=[
                # adjacency tile: column block picked from the nonzero table
                pl.BlockSpec((tm, tk),
                             lambda i, k, tbl, cnt: (i, tbl[i * n_k + k])),
                # matching support row block
                pl.BlockSpec((tk, f_out_p),
                             lambda i, k, tbl, cnt: (tbl[i * n_k + k], 0)),
                # bias, resident
                pl.BlockSpec((1, f_out_p), lambda i, k, tbl, cnt: (0, 0)),
            ],
            out_specs=pl.BlockSpec((tm, f_out_p),
                                   lambda i, k, tbl, cnt: (i, 0)),
            scratch_shapes=[pltpu.VMEM((tm, f_out_p), jnp.float32)],
        ),
        compiler_params=pltpu.CompilerParams(
            dimension_semantics=("parallel", "arbitrary"),
            vmem_limit_bytes=_vmem_limit(
                2 * tm * tk * 2 + 2 * tk * f_out_p * 2 + 2 * f_out_p * 4
                + 2 * tm * f_out_p * out_itemsize + tm * f_out_p * 4),
        ),
    )(prepared.block_tbl, prepared.block_cnt, prepared.adj_p, support, b_p)

    return out_p[:N, :F_out]


def reference(x, adj, weight, bias):
    support = x @ weight
    return adj @ support + bias[None, :]


if __name__ == "__main__":
    # small, forward-implied shapes
    N = 64          # number of graph nodes
    F_IN = 32       # in_features
    F_OUT = 16      # out_features

    key = jax.random.PRNGKey(0)
    kx, kadj, kw = jax.random.split(key, 3)

    x = jax.random.normal(kx, (N, F_IN), dtype=jnp.float32)

    # symmetric, row-normalized-ish dense adjacency (stand-in for sparse adj)
    a = (jax.random.uniform(kadj, (N, N)) < 0.1).astype(jnp.float32)
    adj = a + a.T + jnp.eye(N, dtype=jnp.float32)
    adj = adj / jnp.maximum(adj.sum(axis=1, keepdims=True), 1.0)

    # deterministic parameter init, matching reset_parameters():
    #   weight ~ U(-stdv, stdv), stdv = 1/sqrt(out_features); bias = 0
    stdv = 1.0 / (F_OUT ** 0.5)
    weight = jax.random.uniform(kw, (F_IN, F_OUT), dtype=jnp.float32,
                                minval=-stdv, maxval=stdv)
    bias = jnp.zeros((F_OUT,), dtype=jnp.float32)

    # adjacency pad/cast + nonzero-block table built ONCE per graph (hoisted)
    prepared = prepare_adjacency(adj)

    out = graph_convolution(x, prepared, weight, bias)
    out = jax.block_until_ready(out)

    ref = reference(x, adj, weight, bias)
    assert out.shape == (N, F_OUT)
    # bf16 inputs with f32 accumulation -> relaxed tolerance vs f32 reference
    err = float(jnp.max(jnp.abs(out - ref)))
    assert jnp.allclose(out, ref, atol=2e-2, rtol=2e-2), err

    print("KERNEL_OK")
</pallas_src>

<mosaic_0001>
module attributes {stable_mosaic.version = 11 : i64} {
  func.func @_support_kernel(%arg0: i32, %arg1: i32, %arg2: memref<128x128xbf16, #tpu.memory_space<vmem>>, %arg3: memref<128x128xbf16, #tpu.memory_space<vmem>>, %arg4: memref<128x128xbf16, #tpu.memory_space<vmem>>, %arg5: memref<128x128xf32, #tpu.memory_space<vmem>>) attributes {dimension_semantics = [#tpu.dimension_semantics<parallel>, #tpu.dimension_semantics<arbitrary>], iteration_bounds = array<i64: 1, 1>, scalar_prefetch = 0 : i64, scratch_operands = 1 : i64, tpu.core_type = #tpu.core_type<tc>, window_params = [{transform_indices = @transform_0, window_bounds = array<i64: 128, 128>}, {transform_indices = @transform_1, window_bounds = array<i64: 128, 128>}, {transform_indices = @transform_2, window_bounds = array<i64: 128, 128>}]} {
    %c0_i32 = arith.constant 0 : i32
    %0 = arith.cmpi eq, %arg1, %c0_i32 : i32
    %1 = arith.extui %0 : i1 to i32
    %c0_i32_0 = arith.constant 0 : i32
    %2 = arith.cmpi ne, %1, %c0_i32_0 : i32
    scf.if %2 {
      %cst_10 = arith.constant 0.000000e+00 : f32
      %12 = vector.broadcast %cst_10 : f32 to vector<128x128xf32>
      %c0_11 = arith.constant 0 : index
      %c0_12 = arith.constant 0 : index
      %13 = vector.load %arg5[%c0_11, %c0_12] : memref<128x128xf32, #tpu.memory_space<vmem>>, vector<128x128xf32>
      tpu.vector_store %arg5[%c0_11, %c0_12], %12 {strides = array<i32>} : memref<128x128xf32, #tpu.memory_space<vmem>>, vector<128x128xf32>,
    } else {
    }
    %c0 = arith.constant 0 : index
    %c0_1 = arith.constant 0 : index
    %3 = vector.load %arg5[%c0, %c0_1] : memref<128x128xf32, #tpu.memory_space<vmem>>, vector<128x128xf32>
    %c0_2 = arith.constant 0 : index
    %c0_3 = arith.constant 0 : index
    %4 = vector.load %arg2[%c0_2, %c0_3] : memref<128x128xbf16, #tpu.memory_space<vmem>>, vector<128x128xbf16>
    %c0_4 = arith.constant 0 : index
    %c0_5 = arith.constant 0 : index
    %5 = vector.load %arg3[%c0_4, %c0_5] : memref<128x128xbf16, #tpu.memory_space<vmem>>, vector<128x128xbf16>
    %cst = arith.constant dense<0.000000e+00> : vector<128x128xf32>
    %6 = tpu.matmul %4, %5, %cst {dimension_numbers = #tpu.dot_dimension_numbers<[1], [0], [0], [1], [0, 0, 1, 1], [], []>} : vector<128x128xbf16>, vector<128x128xbf16>, vector<128x128xf32> -> vector<128x128xf32>
    %7 = arith.addf %3, %6 : vector<128x128xf32>
    %c0_6 = arith.constant 0 : index
    %c0_7 = arith.constant 0 : index
    %8 = vector.load %arg5[%c0_6, %c0_7] : memref<128x128xf32, #tpu.memory_space<vmem>>, vector<128x128xf32>
    tpu.vector_store %arg5[%c0_6, %c0_7], %7 {strides = array<i32>} : memref<128x128xf32, #tpu.memory_space<vmem>>, vector<128x128xf32>,
    %c0_i32_8 = arith.constant 0 : i32
    %9 = arith.cmpi eq, %arg1, %c0_i32_8 : i32
    %10 = arith.extui %9 : i1 to i32
    %c0_i32_9 = arith.constant 0 : i32
    %11 = arith.cmpi ne, %10, %c0_i32_9 : i32
    scf.if %11 {
      %c0_10 = arith.constant 0 : index
      %c0_11 = arith.constant 0 : index
      %12 = vector.load %arg5[%c0_10, %c0_11] : memref<128x128xf32, #tpu.memory_space<vmem>>, vector<128x128xf32>
      %13 = arith.truncf %12 : vector<128x128xf32> to vector<128x128xbf16>
      %c0_12 = arith.constant 0 : index
      %c0_13 = arith.constant 0 : index
      %14 = vector.load %arg4[%c0_12, %c0_13] : memref<128x128xbf16, #tpu.memory_space<vmem>>, vector<128x128xbf16>
      tpu.vector_store %arg4[%c0_12, %c0_13], %13 {strides = array<i32>} : memref<128x128xbf16, #tpu.memory_space<vmem>>, vector<128x128xbf16>,
    } else {
    }
    return
  }
  func.func @transform_0(%arg0: i32, %arg1: i32) -> (i32, i32) {
    %c0_i32 = arith.constant 0 : i32
    return %arg0, %arg1 : i32, i32
  }
  func.func @transform_1(%arg0: i32, %arg1: i32) -> (i32, i32) {
    %c0_i32 = arith.constant 0 : i32
    %c0_i32_0 = arith.constant 0 : i32
    return %arg1, %c0_i32 : i32, i32
  }
  func.func @transform_2(%arg0: i32, %arg1: i32) -> (i32, i32) {
    %c0_i32 = arith.constant 0 : i32
    %c0_i32_0 = arith.constant 0 : i32
    return %arg0, %c0_i32 : i32, i32
  }
}

</mosaic_0001>

<bundles_post_ra>
// kernel: tpu_custom_call.1
= control target key start
LH: loop header
LB: loop body
LE: loop exit
PB: predicated region body
PF: predicated region fallthrough
CT: control target
= control target key end

     0   :  { %7 = vsyncpa [#allocation4], 0  ;;  %s735_s0 = inlined_call_operand.hbm [shape: bf16[128,128], index: 0, kind: input, shape index: {}]   ;;  %s736_s1 = inlined_call_operand.hbm [shape: bf16[128,128], index: 1, kind: input, shape index: {}]   ;;  %s737_s2 = inlined_call_operand.hbm [shape: bf16[128,128], index: 2, kind: output, shape index: {}]  }
   0x1   :  { %8 = vsyncpa [#allocation7], 0 }
   0x2   :  { %9 = vsyncpa [#allocation5], 0  ;;  %s697_s9 = smov [#allocation3]  }
   0x3   :  { %s15_s10 = sshll.u32 %s697_s9, 4  ;;  %s16_s10 = int_to_ptr.vmem [resolvable:$true] %s15_s10 }
   0x4   :  { %s639_s11 = scalar_lea.vmem %s16_s10, 1024  ;;  %p644_p1 = scmp.lt.s32.totalorder %s16_s10, %s16_s10 }
   0x5   :  { %p640_p0 = scmp.ne.s32.totalorder %s16_s10, %s639_s11  ;;  %p645_p2 = scmp.lt.s32.totalorder %s639_s11, %s639_s11 }
   0x7   :  { %p646_p3 = por %p645_p2, %p644_p1 }
   0x9   :  { %p647_p4 = pnand %p646_p3, %p640_p0 }
   0xb   :  { %650 = shalt.err (!%p647_p4)
}
   0xc   :  { %s698_s12 = smov 64   ;;  %s699_s13 = smov 4  }
   0xd   :  { %21 = dma.hbm_to_vmem [thread:$0]  %s735_s0, 1024, %s16_s10, [#allocation4], %s698_s12, %s698_s12, %s699_s13  }
   0xe   :  { %s700_s16 = smov [#allocation6]  }
   0xf   :  { %s27_s17 = sshll.u32 %s700_s16, 4  ;;  %s28_s17 = int_to_ptr.vmem [resolvable:$true] %s27_s17 }
  0x10   :  { %s659_s18 = scalar_lea.vmem %s28_s17, 1024  ;;  %p664_p6 = scmp.lt.s32.totalorder %s28_s17, %s28_s17 }
  0x11   :  { %p660_p5 = scmp.ne.s32.totalorder %s28_s17, %s659_s18  ;;  %p665_p7 = scmp.lt.s32.totalorder %s659_s18, %s659_s18 }
  0x13   :  { %p666_p8 = por %p665_p7, %p664_p6 }
  0x15   :  { %p667_p9 = pnand %p666_p8, %p660_p5 }
  0x17   :  { %670 = shalt.err (!%p667_p9)
}
  0x18   :  { %33 = dma.hbm_to_vmem [thread:$0]  %s736_s1, 1024, %s28_s17, [#allocation7], %s698_s12, %s698_s12, %s699_s13  }
  0x19   :  { %691 = dma.done.wait [#allocation4], 1024  }
  0x1a   :  { %692 = vsyncadd [#allocation4], 4294966272 }
  0x1b   :  { %693 = dma.done.wait [#allocation7], 1024  }
  0x1c   :  { %694 = vsyncadd [#allocation7], 4294966272  ;;  %v615_v0 = vld [vmem:[#allocation6 + $0x38] sm:$0xff]   ;;  %v616_v1 = vld [vmem:[#allocation6 + $0x30] sm:$0xff]   ;;  %s701_s0 = smov [#allocation8]  }
  0x1d   :  { %562 = vmatprep.subr.bf16.mxu0 %v615_v0  ;;  %594 = vmatprep.subr.bf16.mxu1 %v615_v0  ;;  %v617_v2 = vld [vmem:[#allocation6 + $0x28] sm:$0xff]   ;;  %v618_v3 = vld [vmem:[#allocation6 + $0x20] sm:$0xff]   ;;  %v619_v6 = vld [vmem:[#allocation6 + $0x18] sm:$0xff]   ;;  %s438_s1 = sshll.u32 %s701_s0, 4  ;;  %s439_s1 = int_to_ptr.vmem [resolvable:$true] %s438_s1 }
  0x1e   :  { %563 = vmatpush3.bf16.msra.mxu0 %v615_v0  ;;  %602 = vmatpush3.bf16.msra.mxu1 %v615_v0  ;;  %v623_v4 = vld [vmem:[#allocation3] sm:$0xff]   ;;  %v620_v7 = vld [vmem:[#allocation6 + $0x10] sm:$0xff]   ;;  %v621_v8 = vld [vmem:[#allocation6 + $0x8] sm:$0xff]   ;;  %s671_s21 = scalar_lea.vmem %s439_s1, 1024  ;;  %p676_p11 = scmp.lt.s32.totalorder %s439_s1, %s439_s1 }
  0x1f   :  { %564 = vmatprep.subr.bf16.mxu0 %v616_v1  ;;  %595 = vmatprep.subr.bf16.mxu1 %v616_v1  ;;  %v624_v5 = vld [vmem:[#allocation3 + $0x20] sm:$0xff]   ;;  %v625_v10 = vld [vmem:[#allocation3 + $0x8] sm:$0xff]   ;;  %v627_v12 = vld [vmem:[#allocation3 + $0x10] sm:$0xff]   ;;  %p672_p10 = scmp.ne.s32.totalorder %s439_s1, %s671_s21  ;;  %p677_p12 = scmp.lt.s32.totalorder %s671_s21, %s671_s21 }
  0x20   :  { %578 = vmatprep.mubr.bf16.mxu0 %v623_v4  ;;  %586 = vmatprep.mubr.bf16.mxu1 %v624_v5  ;;  %v622_v9 = vld [vmem:[#allocation6] sm:$0xff]   ;;  %v626_v11 = vld [vmem:[#allocation3 + $0x28] sm:$0xff]   ;;  %v628_v13 = vld [vmem:[#allocation3 + $0x30] sm:$0xff]  }
  0x21   :  { %v629_v14 = vld [vmem:[#allocation3 + $0x18] sm:$0xff]   ;;  %p678_p13 = por %p677_p12, %p676_p11 }
  0x22   :  { %565 = vmatpush3.bf16.msra.mxu0 %v616_v1  ;;  %603 = vmatpush3.bf16.msra.mxu1 %v616_v1  ;;  %v630_v15 = vld [vmem:[#allocation3 + $0x38] sm:$0xff]  }
  0x23   :  { %566 = vmatprep.subr.bf16.mxu0 %v617_v2  ;;  %596 = vmatprep.subr.bf16.mxu1 %v617_v2  ;;  %p679_p0 = pnand %p678_p13, %p672_p10 }
  0x26   :  { %567 = vmatpush3.bf16.msra.mxu0 %v617_v2  ;;  %604 = vmatpush3.bf16.msra.mxu1 %v617_v2 }
  0x27   :  { %568 = vmatprep.subr.bf16.mxu0 %v618_v3  ;;  %597 = vmatprep.subr.bf16.mxu1 %v618_v3 }
  0x2a   :  { %569 = vmatpush3.bf16.msra.mxu0 %v618_v3  ;;  %605 = vmatpush3.bf16.msra.mxu1 %v618_v3 }
  0x2b   :  { %570 = vmatprep.subr.bf16.mxu0 %v619_v6  ;;  %598 = vmatprep.subr.bf16.mxu1 %v619_v6 }
  0x2e   :  { %571 = vmatpush3.bf16.msra.mxu0 %v619_v6  ;;  %606 = vmatpush3.bf16.msra.mxu1 %v619_v6 }
  0x2f   :  { %572 = vmatprep.subr.bf16.mxu0 %v620_v7  ;;  %599 = vmatprep.subr.bf16.mxu1 %v620_v7 }
  0x32   :  { %573 = vmatpush3.bf16.msra.mxu0 %v620_v7  ;;  %607 = vmatpush3.bf16.msra.mxu1 %v620_v7 }
  0x33   :  { %574 = vmatprep.subr.bf16.mxu0 %v621_v8  ;;  %600 = vmatprep.subr.bf16.mxu1 %v621_v8 }
  0x36   :  { %575 = vmatpush3.bf16.msra.mxu0 %v621_v8  ;;  %608 = vmatpush3.bf16.msra.mxu1 %v621_v8 }
  0x37   :  { %576 = vmatprep.subr.bf16.mxu0 %v622_v9  ;;  %601 = vmatprep.subr.bf16.mxu1 %v622_v9 }
  0x3a   :  { %577 = vmatpush3.bf16.msra.mxu0 %v622_v9  ;;  %609 = vmatpush3.bf16.msra.mxu1 %v622_v9 }
  0x3d   :  { %579 = vmatmul.mubr.bf16.vlgmr.msra.gmra.mxu0 %v625_v10  ;;  %587 = vmatmul.mubr.bf16.vlgmr.msra.gmra.mxu1 %v626_v11 }
  0x3e   :  { %582 = vmatprep.mubr.bf16.mxu0 %v627_v12  ;;  %590 = vmatprep.mubr.bf16.mxu1 %v628_v13 }
  0x45   :  { %583 = vmatmul.mubr.bf16.gmra.mxu0 %v629_v14  ;;  %591 = vmatmul.mubr.bf16.gmra.mxu1 %v630_v15 }
  0xfd   :  { %v580_v16 = vpop.f32.mrf.mxu0  ;;  %v588_v17 = vpop.f32.mrf.mxu1 }
  0xff   :  { %v239_v18 = vpop.f32.mrf.mxu0  ;;  %v271_v19 = vpop.f32.mrf.mxu1 }
 0x101   :  { %v581_v20 = vpop.f32.mrf.mxu0  ;;  %v589_v21 = vpop.f32.mrf.mxu1 }
 0x102   :  { %v507_v22 = vpack.c.bf16 %v581_v20, %v580_v16  ;;  %v527_v23 = vpack.c.bf16 %v589_v21, %v588_v17 }
 0x103   :  { %v242_v24 = vpop.f32.mrf.mxu0  ;;  %v274_v25 = vpop.f32.mrf.mxu1 }
 0x104   :  { %539 = vst [vmem:[#allocation8 + $0x8] sm:$0xff] %v507_v22   ;;  %543 = vst [vmem:[#allocation8 + $0x28] sm:$0xff] %v527_v23   ;;  %v502_v26 = vpack.c.bf16 %v242_v24, %v239_v18  ;;  %v522_v27 = vpack.c.bf16 %v274_v25, %v271_v19 }
 0x105   :  { %v584_v28 = vpop.f32.mrf.mxu0  ;;  %v592_v29 = vpop.f32.mrf.mxu1 }
 0x106   :  { %503 = vst [vmem:[#allocation8] sm:$0xff] %v502_v26   ;;  %542 = vst [vmem:[#allocation8 + $0x20] sm:$0xff] %v522_v27  }
 0x107   :  { %v255_v30 = vpop.f32.mrf.mxu0  ;;  %v287_v31 = vpop.f32.mrf.mxu1 }
 0x109   :  { %v585_v32 = vpop.f32.mrf.mxu0  ;;  %v593_v33 = vpop.f32.mrf.mxu1 }
 0x10a   :  { %v517_v34 = vpack.c.bf16 %v585_v32, %v584_v28  ;;  %v537_v35 = vpack.c.bf16 %v593_v33, %v592_v29 }
 0x10b   :  { %v258_v36 = vpop.f32.mrf.mxu0  ;;  %v290_v37 = vpop.f32.mrf.mxu1 }
 0x10c   :  { %541 = vst [vmem:[#allocation8 + $0x18] sm:$0xff] %v517_v34   ;;  %545 = vst [vmem:[#allocation8 + $0x38] sm:$0xff] %v537_v35   ;;  %v512_v38 = vpack.c.bf16 %v258_v36, %v255_v30  ;;  %v532_v39 = vpack.c.bf16 %v290_v37, %v287_v31 }
 0x10e   :  { %540 = vst [vmem:[#allocation8 + $0x10] sm:$0xff] %v512_v38   ;;  %544 = vst [vmem:[#allocation8 + $0x30] sm:$0xff] %v532_v39  }
 0x10f   :  { %682 = shalt.err (!%p679_p0)
}
 0x110   :  { %444 = dma.vmem_to_hbm [thread:$0]  %s439_s1, 1024, %s737_s2, [#allocation5], %s698_s12, %s698_s12, %s699_s13  }
 0x111   :  { %695 = dma.done.wait [#allocation5], 1024  }
 0x112   :  { %696 = vsyncadd [#allocation5], 4294966272 }
 0x113   :  { %448 = vsyncpa [#allocation4], 1 }
 0x114   :  { %449 = vsyncpa [#allocation7], 1 }
 0x115   :  { %450 = vsyncpa [#allocation5], 1 }

</bundles_post_ra>
